<compile_context>
chip_gen: v7x
topology: tpu7x:2x2x1
jax: 0.10.0
libtpu: 0.0.40
codegen_flags: <defaults>
</compile_context>

<pallas_src>
import math

import jax
import jax.numpy as jnp
from jax.experimental import pallas as pl
from jax.experimental.pallas import tpu as pltpu


def _value_net_kernel(x_ref, w1_ref, b1_ref, w2_ref, b2_ref, w3_ref, o_ref):
    # Layer 1: bf16 matmul on the MXU, f32 accumulation, f32 bias + ReLU.
    h1 = jnp.dot(x_ref[...], w1_ref[...], preferred_element_type=jnp.float32)
    h1 = jnp.maximum(h1 + b1_ref[...], 0.0)
    # Layer 2: cast activations to bf16 for the MXU, keep accum/bias/ReLU f32.
    h2 = jnp.dot(h1.astype(jnp.bfloat16), w2_ref[...],
                 preferred_element_type=jnp.float32)
    h2 = jnp.maximum(h2 + b2_ref[...], 0.0)
    # Value head: [H2, 1] matmul replaced by VPU multiply + lane reduce
    # (w3 is passed as a [1, H2] f32 row).  b3 is folded in on the host.
    v = jnp.sum(h2 * w3_ref[...], axis=-1, keepdims=True)
    o_ref[...] = v.astype(o_ref.dtype)
    # TODO(synk): if the [TB, 1] store ever shows in a profile, emit a
    # lane-dense [1, TB] output instead (transpose via XLU) and reshape outside.


def _pad_axis(a, axis, mult):
    pad = (-a.shape[axis]) % mult
    if pad == 0:
        return a
    widths = [(0, 0)] * a.ndim
    widths[axis] = (0, pad)
    return jnp.pad(a, widths)


def value_network_forward(x, params, *, tb_max=512,
                          vmem_limit_bytes=32 * 1024 * 1024):
    """Fused ValueNetwork forward in one Pallas TPU kernel.

    x: [B, input_dim] or [input_dim] float32
    params: dict with w1 [D,H], b1 [1,H], w2 [H,H2], b2 [1,H2], w3 [H2,1],
            b3 scalar.  (Weights stored as [in, out] so the kernel does x @ W.)
    Returns: [B] float32 (matches torch .squeeze(-1)).
    """
    x = jnp.asarray(x, jnp.float32)
    if x.ndim == 1:
        x = x[None, :]
    B, D = x.shape

    w1, b1 = params["w1"], params["b1"]
    w2, b2 = params["w2"], params["b2"]
    w3, b3 = params["w3"], params["b3"]
    H, H2 = w1.shape[1], w2.shape[1]

    # --- pad feature dims to multiples of 128 (zero padding is inert) -------
    x_p = _pad_axis(x, 1, 128)
    w1_p = _pad_axis(_pad_axis(w1, 0, 128), 1, 128)
    b1_p = _pad_axis(b1, 1, 128)
    w2_p = _pad_axis(_pad_axis(w2, 0, 128), 1, 128)
    b2_p = _pad_axis(b2, 1, 128)
    w3_row = _pad_axis(w3.reshape(1, H2), 1, 128)          # [1, H2_pad] (f32)
    D_p, H_p, H2_p = x_p.shape[1], w1_p.shape[1], w2_p.shape[1]

    # --- pick batch tile & pad batch ---------------------------------------
    # Note: for very small B the fixed per-call cost dominates a 3-layer MLP;
    # callers that only ever see B of a few tens may prefer a plain-XLA path.
    b_pad8 = pl.cdiv(B, 8) * 8
    if b_pad8 >= tb_max:
        TB = tb_max
        B_p = pl.cdiv(B, TB) * TB
    else:
        TB = b_pad8
        B_p = b_pad8
    x_p = _pad_axis(x_p, 0, B_p - B + x_p.shape[0]) if False else jnp.pad(
        x_p, ((0, B_p - B), (0, 0)))

    # --- bf16 inputs for the MXU (halves DMA bytes for x and W1/W2) --------
    x_bf = x_p.astype(jnp.bfloat16)
    w1_bf = w1_p.astype(jnp.bfloat16)
    w2_bf = w2_p.astype(jnp.bfloat16)

    n_tiles = B_p // TB
    flops = 2 * B_p * (D_p * H_p + H_p * H2_p + H2_p)
    bytes_accessed = (x_bf.size * 2 + w1_bf.size * 2 + w2_bf.size * 2
                      + b1_p.size * 4 + b2_p.size * 4 + w3_row.size * 4
                      + B_p * 4)

    out = pl.pallas_call(
        _value_net_kernel,
        out_shape=jax.ShapeDtypeStruct((B_p, 1), jnp.float32),
        grid=(n_tiles,),
        in_specs=[
            pl.BlockSpec((TB, D_p), lambda i: (i, 0)),        # x tile (pipelined)
            pl.BlockSpec((D_p, H_p), lambda i: (0, 0)),       # W1 (resident)
            pl.BlockSpec((1, H_p), lambda i: (0, 0)),         # b1
            pl.BlockSpec((H_p, H2_p), lambda i: (0, 0)),      # W2
            pl.BlockSpec((1, H2_p), lambda i: (0, 0)),        # b2
            pl.BlockSpec((1, H2_p), lambda i: (0, 0)),        # w3 row
        ],
        out_specs=pl.BlockSpec((TB, 1), lambda i: (i, 0)),
        compiler_params=pltpu.CompilerParams(
            dimension_semantics=("parallel",),
            vmem_limit_bytes=vmem_limit_bytes),
        cost_estimate=pl.CostEstimate(
            flops=flops, transcendentals=0, bytes_accessed=bytes_accessed),
    )(x_bf, w1_bf, b1_p, w2_bf, b2_p, w3_row)

    # Fold the scalar output bias on the host and drop padded rows / lane dim.
    return out[:B, 0] + b3


def init_value_network_params(key, input_dim, hidden_dim=256):
    """Kaiming-uniform (relu gain) weights, zero biases — mirrors
    ValueNetwork.init_weights(). Weights stored as [in, out]."""
    h2 = hidden_dim // 2
    k1, k2, k3 = jax.random.split(key, 3)

    def kaiming_uniform(k, fan_in, fan_out):
        bound = math.sqrt(2.0) * math.sqrt(3.0 / fan_in)
        return jax.random.uniform(k, (fan_in, fan_out), jnp.float32,
                                  minval=-bound, maxval=bound)

    return {
        "w1": kaiming_uniform(k1, input_dim, hidden_dim),
        "b1": jnp.zeros((1, hidden_dim), jnp.float32),
        "w2": kaiming_uniform(k2, hidden_dim, h2),
        "b2": jnp.zeros((1, h2), jnp.float32),
        "w3": kaiming_uniform(k3, h2, 1),
        "b3": jnp.zeros((), jnp.float32),
    }


if __name__ == "__main__":
    key = jax.random.PRNGKey(0)
    k_param, k_x = jax.random.split(key)

    batch = 2
    input_dim = 16
    hidden_dim = 32

    params = init_value_network_params(k_param, input_dim, hidden_dim)
    x = jax.random.normal(k_x, (batch, input_dim), jnp.float32)

    v = value_network_forward(x, params)
    jax.block_until_ready(v)

    # Reference in plain JAX using the same bf16-input / f32-accumulate path.
    xb = x.astype(jnp.bfloat16)
    w1b = params["w1"].astype(jnp.bfloat16)
    w2b = params["w2"].astype(jnp.bfloat16)
    h1 = jnp.maximum(
        jnp.dot(xb, w1b, preferred_element_type=jnp.float32) + params["b1"], 0.0)
    h2 = jnp.maximum(
        jnp.dot(h1.astype(jnp.bfloat16), w2b,
                preferred_element_type=jnp.float32) + params["b2"], 0.0)
    ref = (h2 @ params["w3"])[:, 0] + params["b3"]

    assert v.shape == (batch,)
    assert jnp.allclose(v, ref, atol=1e-3, rtol=1e-3), (v, ref)

    print("KERNEL_OK")
</pallas_src>

<mosaic_0001>
module attributes {stable_mosaic.version = 11 : i64} {
  func.func @_value_net_kernel(%arg0: i32, %arg1: memref<8x128xbf16, #tpu.memory_space<vmem>>, %arg2: memref<128x128xbf16, #tpu.memory_space<vmem>>, %arg3: memref<1x128xf32, #tpu.memory_space<vmem>>, %arg4: memref<128x128xbf16, #tpu.memory_space<vmem>>, %arg5: memref<1x128xf32, #tpu.memory_space<vmem>>, %arg6: memref<1x128xf32, #tpu.memory_space<vmem>>, %arg7: memref<8x1xf32, #tpu.memory_space<vmem>>) attributes {dimension_semantics = [#tpu.dimension_semantics<parallel>], iteration_bounds = array<i64: 1>, scalar_prefetch = 0 : i64, scratch_operands = 0 : i64, tpu.core_type = #tpu.core_type<tc>, window_params = [{transform_indices = @transform_0, window_bounds = array<i64: 8, 128>}, {pipeline_mode = #tpu.pipeline_mode<synchronous>, transform_indices = @transform_1, window_bounds = array<i64: 128, 128>}, {pipeline_mode = #tpu.pipeline_mode<synchronous>, transform_indices = @transform_2, window_bounds = array<i64: 1, 128>}, {pipeline_mode = #tpu.pipeline_mode<synchronous>, transform_indices = @transform_3, window_bounds = array<i64: 128, 128>}, {pipeline_mode = #tpu.pipeline_mode<synchronous>, transform_indices = @transform_4, window_bounds = array<i64: 1, 128>}, {pipeline_mode = #tpu.pipeline_mode<synchronous>, transform_indices = @transform_5, window_bounds = array<i64: 1, 128>}, {transform_indices = @transform_6, window_bounds = array<i64: 8, 1>}]} {
    %c0 = arith.constant 0 : index
    %c0_0 = arith.constant 0 : index
    %0 = vector.load %arg1[%c0, %c0_0] : memref<8x128xbf16, #tpu.memory_space<vmem>>, vector<8x128xbf16>
    %c0_1 = arith.constant 0 : index
    %c0_2 = arith.constant 0 : index
    %1 = vector.load %arg2[%c0_1, %c0_2] : memref<128x128xbf16, #tpu.memory_space<vmem>>, vector<128x128xbf16>
    %cst = arith.constant dense<0.000000e+00> : vector<8x128xf32>
    %2 = tpu.matmul %0, %1, %cst {dimension_numbers = #tpu.dot_dimension_numbers<[1], [0], [0], [1], [0, 0, 1, 1], [], []>} : vector<8x128xbf16>, vector<128x128xbf16>, vector<8x128xf32> -> vector<8x128xf32>
    %c0_3 = arith.constant 0 : index
    %c0_4 = arith.constant 0 : index
    %3 = vector.load %arg3[%c0_3, %c0_4] : memref<1x128xf32, #tpu.memory_space<vmem>>, vector<1x128xf32>
    %4 = vector.broadcast %3 : vector<1x128xf32> to vector<8x128xf32>
    %5 = arith.addf %2, %4 : vector<8x128xf32>
    %cst_5 = arith.constant 0.000000e+00 : f32
    %6 = vector.broadcast %cst_5 : f32 to vector<8x128xf32>
    %7 = arith.maximumf %5, %6 : vector<8x128xf32>
    %8 = arith.truncf %7 : vector<8x128xf32> to vector<8x128xbf16>
    %c0_6 = arith.constant 0 : index
    %c0_7 = arith.constant 0 : index
    %9 = vector.load %arg4[%c0_6, %c0_7] : memref<128x128xbf16, #tpu.memory_space<vmem>>, vector<128x128xbf16>
    %cst_8 = arith.constant dense<0.000000e+00> : vector<8x128xf32>
    %10 = tpu.matmul %8, %9, %cst_8 {dimension_numbers = #tpu.dot_dimension_numbers<[1], [0], [0], [1], [0, 0, 1, 1], [], []>} : vector<8x128xbf16>, vector<128x128xbf16>, vector<8x128xf32> -> vector<8x128xf32>
    %c0_9 = arith.constant 0 : index
    %c0_10 = arith.constant 0 : index
    %11 = vector.load %arg5[%c0_9, %c0_10] : memref<1x128xf32, #tpu.memory_space<vmem>>, vector<1x128xf32>
    %12 = vector.broadcast %11 : vector<1x128xf32> to vector<8x128xf32>
    %13 = arith.addf %10, %12 : vector<8x128xf32>
    %cst_11 = arith.constant 0.000000e+00 : f32
    %14 = vector.broadcast %cst_11 : f32 to vector<8x128xf32>
    %15 = arith.maximumf %13, %14 : vector<8x128xf32>
    %c0_12 = arith.constant 0 : index
    %c0_13 = arith.constant 0 : index
    %16 = vector.load %arg6[%c0_12, %c0_13] : memref<1x128xf32, #tpu.memory_space<vmem>>, vector<1x128xf32>
    %17 = vector.broadcast %16 : vector<1x128xf32> to vector<8x128xf32>
    %18 = arith.mulf %15, %17 : vector<8x128xf32>
    %cst_14 = arith.constant dense<0.000000e+00> : vector<8xf32>
    %19 = vector.multi_reduction <add>, %18, %cst_14 [1] : vector<8x128xf32> to vector<8xf32>
    %20 = vector.shape_cast %19 : vector<8xf32> to vector<8x1xf32>
    %c0_15 = arith.constant 0 : index
    %c0_16 = arith.constant 0 : index
    %21 = vector.load %arg7[%c0_15, %c0_16] : memref<8x1xf32, #tpu.memory_space<vmem>>, vector<8x1xf32>
    tpu.vector_store %arg7[%c0_15, %c0_16], %20 {strides = array<i32>} : memref<8x1xf32, #tpu.memory_space<vmem>>, vector<8x1xf32>,
    return
  }
  func.func @transform_0(%arg0: i32) -> (i32, i32) {
    %c0_i32 = arith.constant 0 : i32
    %c0_i32_0 = arith.constant 0 : i32
    return %arg0, %c0_i32 : i32, i32
  }
  func.func @transform_1(%arg0: i32) -> (i32, i32) {
    %c0_i32 = arith.constant 0 : i32
    %c0_i32_0 = arith.constant 0 : i32
    %c0_i32_1 = arith.constant 0 : i32
    return %c0_i32, %c0_i32_0 : i32, i32
  }
  func.func @transform_2(%arg0: i32) -> (i32, i32) {
    %c0_i32 = arith.constant 0 : i32
    %c0_i32_0 = arith.constant 0 : i32
    %c0_i32_1 = arith.constant 0 : i32
    return %c0_i32, %c0_i32_0 : i32, i32
  }
  func.func @transform_3(%arg0: i32) -> (i32, i32) {
    %c0_i32 = arith.constant 0 : i32
    %c0_i32_0 = arith.constant 0 : i32
    %c0_i32_1 = arith.constant 0 : i32
    return %c0_i32, %c0_i32_0 : i32, i32
  }
  func.func @transform_4(%arg0: i32) -> (i32, i32) {
    %c0_i32 = arith.constant 0 : i32
    %c0_i32_0 = arith.constant 0 : i32
    %c0_i32_1 = arith.constant 0 : i32
    return %c0_i32, %c0_i32_0 : i32, i32
  }
  func.func @transform_5(%arg0: i32) -> (i32, i32) {
    %c0_i32 = arith.constant 0 : i32
    %c0_i32_0 = arith.constant 0 : i32
    %c0_i32_1 = arith.constant 0 : i32
    return %c0_i32, %c0_i32_0 : i32, i32
  }
  func.func @transform_6(%arg0: i32) -> (i32, i32) {
    %c0_i32 = arith.constant 0 : i32
    %c0_i32_0 = arith.constant 0 : i32
    return %arg0, %c0_i32 : i32, i32
  }
}

</mosaic_0001>

<bundles_post_ra>
// kernel: tpu_custom_call.1
= control target key start
LH: loop header
LB: loop body
LE: loop exit
PB: predicated region body
PF: predicated region fallthrough
CT: control target
= control target key end

     0   :  { %11 = vsyncpa [#allocation3], 0  ;;  %s573_s0 = inlined_call_operand.hbm [shape: bf16[8,128], index: 0, kind: input, shape index: {}]   ;;  %s574_s1 = inlined_call_operand.hbm [shape: bf16[128,128], index: 1, kind: input, shape index: {}]   ;;  %s575_s2 = inlined_call_operand.vmem [shape: f32[1,128], index: 2, kind: input, shape index: {}]   ;;  %s576_s3 = inlined_call_operand.hbm [shape: bf16[128,128], index: 3, kind: input, shape index: {}]   ;;  %s577_s4 = inlined_call_operand.vmem [shape: f32[1,128], index: 4, kind: input, shape index: {}]   ;;  %s578_s5 = inlined_call_operand.vmem [shape: f32[1,128], index: 5, kind: input, shape index: {}]   ;;  %s579_s6 = inlined_call_operand.vmem [shape: f32[8,1], index: 6, kind: output, shape index: {}]  }
   0x1   :  { %12 = vsyncpa [#allocation5], 0  ;;  %s477_s21 = smov [#allocation4]   ;;  %s407_s25 = scalar_lea.hbm %s574_s1, 1024 }
   0x2   :  { %s28_s22 = sshll.u32 %s477_s21, 4  ;;  %p408_p0 = scmp.ne.s32.totalorder %s574_s1, %s407_s25  ;;  %s29_s22 = int_to_ptr.vmem [resolvable:$true] %s28_s22 }
   0x3   :  { %p411_p1 = scmp.lt.u32.totalorder %s407_s25, %s574_s1 }
   0x5   :  { %p413_p2 = pnand %p411_p1, %p408_p0 }
   0x7   :  { %416 = shalt.err (!%p413_p2)
}
   0x8   :  { %s417_s30 = scalar_lea.vmem %s29_s22, 1024  ;;  %p422_p4 = scmp.lt.s32.totalorder %s29_s22, %s29_s22 }
   0x9   :  { %p418_p3 = scmp.ne.s32.totalorder %s29_s22, %s417_s30  ;;  %p423_p5 = scmp.lt.s32.totalorder %s417_s30, %s417_s30 }
   0xb   :  { %p424_p6 = por %p423_p5, %p422_p4 }
   0xd   :  { %p425_p7 = pnand %p424_p6, %p418_p3 }
   0xf   :  { %428 = shalt.err (!%p425_p7)
}
  0x10   :  { %s478_s7 = smov 64   ;;  %s479_s8 = smov 4  }
  0x11   :  { %34 = dma.hbm_to_vmem [thread:$0]  %s574_s1, 1024, %s29_s22, [#allocation5], %s478_s7, %s478_s7, %s479_s8  }
  0x12   :  { %s480_s11 = smov [#allocation2]   ;;  %s481_s13 = smov [#allocation6]  }
  0x13   :  { %s19_s12 = sshll.u32 %s480_s11, 4  ;;  %s42_s14 = sshll.u32 %s481_s13, 4  ;;  %s20_s12 = int_to_ptr.vmem [resolvable:$true] %s19_s12  ;;  %s43_s14 = int_to_ptr.vmem [resolvable:$true] %s42_s14 }
  0x14   :  { %s429_s17 = scalar_lea.hbm %s573_s0, 64 }
  0x15   :  { %p430_p8 = scmp.ne.s32.totalorder %s573_s0, %s429_s17  ;;  %p433_p9 = scmp.lt.u32.totalorder %s429_s17, %s573_s0 }
  0x17   :  { %p435_p10 = pnand %p433_p9, %p430_p8 }
  0x19   :  { %438 = shalt.err (!%p435_p10)
}
  0x1a   :  { %s439_s1 = scalar_lea.vmem %s20_s12, 64  ;;  %p444_p12 = scmp.lt.s32.totalorder %s20_s12, %s20_s12 }
  0x1b   :  { %p440_p11 = scmp.ne.s32.totalorder %s20_s12, %s439_s1  ;;  %p445_p13 = scmp.lt.s32.totalorder %s439_s1, %s439_s1 }
  0x1d   :  { %p446_p0 = por %p445_p13, %p444_p12 }
  0x1f   :  { %p447_p1 = pnand %p446_p0, %p440_p11 }
  0x21   :  { %450 = shalt.err (!%p447_p1)
}
  0x22   :  { %22 = dma.hbm_to_vmem [thread:$0]  %s573_s0, 64, %s20_s12, [#allocation3]  }
  0x23   :  { %s451_s26 = scalar_lea.hbm %s576_s3, 1024 }
  0x24   :  { %p452_p2 = scmp.ne.s32.totalorder %s576_s3, %s451_s26  ;;  %p455_p3 = scmp.lt.u32.totalorder %s451_s26, %s576_s3 }
  0x26   :  { %p457_p4 = pnand %p455_p3, %p452_p2 }
  0x28   :  { %460 = shalt.err (!%p457_p4)
}
  0x29   :  { %s461_s9 = scalar_lea.vmem %s43_s14, 1024  ;;  %p466_p6 = scmp.lt.s32.totalorder %s43_s14, %s43_s14 }
  0x2a   :  { %p462_p5 = scmp.ne.s32.totalorder %s43_s14, %s461_s9  ;;  %p467_p7 = scmp.lt.s32.totalorder %s461_s9, %s461_s9 }
  0x2c   :  { %p468_p8 = por %p467_p7, %p466_p6 }
  0x2e   :  { %p469_p9 = pnand %p468_p8, %p462_p5 }
  0x30   :  { %472 = shalt.err (!%p469_p9)
}
  0x31   :  { %48 = dma.hbm_to_vmem [thread:$0]  %s576_s3, 1024, %s43_s14, [#allocation5], %s478_s7, %s478_s7, %s479_s8  }
  0x32   :  { %473 = dma.done.wait [#allocation3], 64  }
  0x33   :  { %474 = vsyncadd [#allocation3], 4294967232 }
  0x34   :  { %475 = dma.done.wait [#allocation5], 2048  }
  0x35   :  { %476 = vsyncadd [#allocation5], 4294965248  ;;  %v482_v0 = vmov 0.0   ;;  %vm483_vm0 = vmmov 0   ;;  %v391_v1 = vld [vmem:[#allocation4] sm:$0xff]   ;;  %v392_v2 = vld [vmem:[#allocation4 + $0x8] sm:$0xff]  }
  0x36   :  { %344 = vmatprep.subr.bf16.mxu0 %v482_v0  ;;  %360 = vmatprep.mubr.msk.bf16.mxu0 %vm483_vm0, %v482_v0  ;;  %v393_v3 = vld [vmem:[#allocation4 + $0x10] sm:$0xff]   ;;  %v399_v4 = vld [vmem:[#allocation6] sm:$0xff]   ;;  %v394_v5 = vld [vmem:[#allocation4 + $0x18] sm:$0xff]   ;;  %vm299_vm1 = vcmask 7168  }
  0x37   :  { %364 = vmatprep.subr.bf16.mxu1 %v482_v0  ;;  %380 = vmatprep.mubr.msk.bf16.mxu1 %vm483_vm0, %v482_v0  ;;  %v400_v6 = vld [vmem:[#allocation6 + $0x8] sm:$0xff]   ;;  %v395_v7 = vld [vmem:[#allocation4 + $0x20] sm:$0xff]   ;;  %v401_v8 = vld [vmem:[#allocation6 + $0x10] sm:$0xff]  }
  0x38   :  { %345 = vmatpush3.bf16.msra.mxu0 %v391_v1  ;;  %365 = vmatpush3.bf16.msra.mxu1 %v399_v4  ;;  %v396_v9 = vld [vmem:[#allocation4 + $0x28] sm:$0xff]   ;;  %v402_v10 = vld [vmem:[#allocation6 + $0x18] sm:$0xff]   ;;  %v397_v11 = vld [vmem:[#allocation4 + $0x30] sm:$0xff]  }
  0x39   :  { %346 = vmatprep.subr.bf16.mxu0 %v482_v0  ;;  %366 = vmatprep.subr.bf16.mxu1 %v482_v0  ;;  %v403_v12 = vld [vmem:[#allocation6 + $0x20] sm:$0xff]   ;;  %v398_v13 = vld [vmem:[#allocation4 + $0x38] sm:$0xff]   ;;  %v404_v14 = vld [vmem:[#allocation6 + $0x28] sm:$0xff]  }
  0x3a   :  { %v63_v15 = vld [vmem:[#allocation2] sm:$0xf]  ;;  %v405_v16 = vld [vmem:[#allocation6 + $0x30] sm:$0xff]  }
  0x3b   :  { %v406_v17 = vld [vmem:[#allocation6 + $0x38] sm:$0xff]  }
  0x3c   :  { %347 = vmatpush3.bf16.msra.mxu0 %v392_v2  ;;  %367 = vmatpush3.bf16.msra.mxu1 %v400_v6  ;;  %v307_v18 = vld [vmem:[%s575_s2] ss:$0 sm:$0xff] }
  0x3d   :  { %348 = vmatprep.subr.bf16.mxu0 %v482_v0  ;;  %368 = vmatprep.subr.bf16.mxu1 %v482_v0  ;;  %v316_v26 = vld [vmem:[%s577_s4] ss:$0 sm:$0xff] }
  0x3e   :  { %v325_v31 = vld [vmem:[%s578_s5] ss:$0 sm:$0xff] }
  0x40   :  { %349 = vmatpush3.bf16.msra.mxu0 %v393_v3  ;;  %369 = vmatpush3.bf16.msra.mxu1 %v401_v8 }
  0x41   :  { %350 = vmatprep.subr.bf16.mxu0 %v482_v0  ;;  %370 = vmatprep.subr.bf16.mxu1 %v482_v0 }
  0x44   :  { %351 = vmatpush3.bf16.msra.mxu0 %v394_v5  ;;  %371 = vmatpush3.bf16.msra.mxu1 %v402_v10 }
  0x45   :  { %352 = vmatprep.subr.bf16.mxu0 %v482_v0  ;;  %372 = vmatprep.subr.bf16.mxu1 %v482_v0 }
  0x48   :  { %353 = vmatpush3.bf16.msra.mxu0 %v395_v7  ;;  %373 = vmatpush3.bf16.msra.mxu1 %v403_v12 }
  0x49   :  { %354 = vmatprep.subr.bf16.mxu0 %v482_v0  ;;  %374 = vmatprep.subr.bf16.mxu1 %v482_v0 }
  0x4c   :  { %355 = vmatpush3.bf16.msra.mxu0 %v396_v9  ;;  %375 = vmatpush3.bf16.msra.mxu1 %v404_v14 }
  0x4d   :  { %356 = vmatprep.subr.bf16.mxu0 %v482_v0  ;;  %376 = vmatprep.subr.bf16.mxu1 %v482_v0 }
  0x50   :  { %357 = vmatpush3.bf16.msra.mxu0 %v397_v11  ;;  %377 = vmatpush3.bf16.msra.mxu1 %v405_v16 }
  0x51   :  { %358 = vmatprep.subr.bf16.mxu0 %v482_v0  ;;  %378 = vmatprep.subr.bf16.mxu1 %v482_v0 }
  0x54   :  { %359 = vmatpush3.bf16.msra.mxu0 %v398_v13  ;;  %379 = vmatpush3.bf16.msra.mxu1 %v406_v17 }
  0x57   :  { %361 = vmatmul.mubr.bf16.vlgmr.msra.gmra.mrb[0].mxu0 %v63_v15 }
 0x12a   :  { %v169_v19 = vpop.f32.mrb[0].mxu0 }
 0x12b   :  { %v170_v20 = vadd.f32 %v307_v18, %v169_v19  ;;  %v362_v21 = vpop.f32.mrb[1].mxu0 }
 0x12c   :  { %v172_v22 = vpop.f32.mrb[2].mxu0 }
 0x12d   :  { %v175_v23 = vmax.f32 %v170_v20, 0.0  ;;  %v363_v24 = vpop.f32.mrb[3].mxu0 }
 0x12f   :  { %v176_v25 = vpack.c.bf16 %v175_v23, %v175_v23 }
 0x131   :  { %381 = vmatmul.mubr.bf16.vlgmr.msra.gmra.mrb[0].mxu1 %v176_v25 }
 0x204   :  { %v282_v27 = vpop.f32.mrb[0].mxu1 }
 0x205   :  { %v283_v28 = vadd.f32 %v316_v26, %v282_v27  ;;  %v382_v29 = vpop.f32.mrb[1].mxu1 }
 0x206   :  { %v285_v30 = vpop.f32.mrb[2].mxu1 }
 0x207   :  { %v288_v32 = vmax.f32 %v283_v28, 0.0  ;;  %v383_v33 = vpop.f32.mrb[3].mxu1 }
 0x209   :  { %v296_v34 = vmul.f32 %v325_v31, %v288_v32 }
 0x20b   :  { %297 = vadd.xlane.f32.xlu0 %v296_v34 }
 0x298   :  { %v298_v35 = vpop.xlane.xlu0 %297 }
 0x299   :  { %300 = vst.msk [vmem:[%s579_s6] sm:$0xff] %vm299_vm1, %v298_v35 }
 0x29a   :  { %305 = vsyncpa [#allocation3], 1 }
 0x29b   :  { %306 = vsyncpa [#allocation5], 1 }

</bundles_post_ra>
